<compile_context>
chip_gen: v7x
topology: tpu7x:2x2x1
jax: 0.10.0
libtpu: 0.0.40
codegen_flags: <defaults>
</compile_context>

<pallas_src>
import functools

import jax
import jax.numpy as jnp
from jax.experimental import pallas as pl
from jax.experimental.pallas import tpu as pltpu

ALPHA = 0.25
GAMMA = 2.0
LANES = 128
SUBLANES = 8
NUM_SHARDS = 2          # split the reduction across 2 TCs (v7x); harmless on 1-TC chips
MAX_BLOCK_ROWS = 4096   # 4096 * 128 * 4 B = 2 MiB per input block


def _round_up(x, m):
    return (x + m - 1) // m * m


def _focal_loss_kernel(x_ref, t_ref, out_ref, *, gamma, binary_targets,
                       approx_recip, rows_valid, block_rows, n_blocks, ragged):
    p = pl.program_id(0)
    j = pl.program_id(1)

    # Output block (index depends only on p) is resident across the j axis and
    # acts as the per-shard accumulator.
    @pl.when(j == 0)
    def _init():
        out_ref[...] = jnp.zeros_like(out_ref)

    x = x_ref[...].astype(jnp.float32)
    t = t_ref[...].astype(jnp.float32)

    # Numerically stable BCE-with-logits (matches torch.nn.BCEWithLogitsLoss):
    #   bce = max(x, 0) - x*t + log(1 + exp(-|x|))
    e = jnp.exp(-jnp.abs(x))                                  # EUP exp
    bce = jnp.maximum(x, 0.0) - x * t + jnp.log(1.0 + e)      # EUP log

    if binary_targets:
        # pt = exp(-bce) = exp(x*t - max(x,0)) / (1 + e).  For t in {0,1} the
        # numerator is either 1 or e, so no second exp is needed (EUP trim).
        mismatch = jnp.logical_xor(x >= 0.0, t >= 0.5)
        numer = jnp.where(mismatch, e, 1.0)
        pt = numer * pl.reciprocal(1.0 + e, approx=approx_recip)
    else:
        pt = jnp.exp(-bce)                                    # general soft targets

    one_minus_pt = 1.0 - pt
    if gamma == 2.0:
        mod = one_minus_pt * one_minus_pt                     # avoid pow on default path
    elif gamma == 1.0:
        mod = jnp.maximum(one_minus_pt, 0.0)
    else:
        # Clamp: 1 - exp(-bce) can round to a tiny negative -> NaN under pow.
        mod = jnp.maximum(one_minus_pt, 0.0) ** gamma
    f_loss = mod * bce                                        # alpha & 1/N folded out

    def _accumulate(vals):
        # Fold the (block_rows, 128) tile into the (8, 128) accumulator with
        # pure VPU adds; no cross-lane/cross-sublane movement per step.
        out_ref[...] += jnp.sum(vals.reshape(-1, SUBLANES, LANES), axis=0)

    if ragged:
        row_start = (p * n_blocks + j) * block_rows
        is_boundary = row_start + block_rows > rows_valid

        @pl.when(jnp.logical_not(is_boundary))
        def _full():
            _accumulate(f_loss)

        @pl.when(is_boundary)
        def _masked():
            rid = row_start + jax.lax.broadcasted_iota(
                jnp.int32, (block_rows, LANES), 0)
            _accumulate(jnp.where(rid < rows_valid, f_loss, 0.0))
    else:
        _accumulate(f_loss)


def focal_loss(inputs, targets, *, alpha=ALPHA, gamma=GAMMA, reduction="mean",
               binary_targets=False, approx_recip=False):
    """Focal loss over a tensor of arbitrary shape (reduction: 'mean' or 'sum')."""
    assert inputs.shape == targets.shape
    if reduction not in ("mean", "sum"):
        # TODO(synk): reduction='none' (per-element output, no reduction) is not
        # implemented in the Pallas path.
        raise NotImplementedError("reduction must be 'mean' or 'sum'")

    total = inputs.size
    x_flat = inputs.reshape(-1)
    t_flat = targets.reshape(-1)

    # Only pad when the element count is not lane-aligned (rare).  Padded
    # elements (logit=-100, target=0) contribute ~0 loss; the mean divides by
    # the true element count.
    pad = (-total) % LANES
    if pad:
        x_flat = jnp.concatenate(
            [x_flat, jnp.full((pad,), -100.0, dtype=x_flat.dtype)])
        t_flat = jnp.concatenate(
            [t_flat, jnp.zeros((pad,), dtype=t_flat.dtype)])

    rows = (total + pad) // LANES
    x2d = x_flat.reshape(rows, LANES)   # lane-dense; free (bitcast) reshape
    t2d = t_flat.reshape(rows, LANES)

    # Big lane-dense blocks; never shrink the tile to satisfy a divisibility
    # constraint -- boundary blocks are masked inside the kernel instead.
    block_rows = min(MAX_BLOCK_ROWS,
                     _round_up(pl.cdiv(rows, NUM_SHARDS), SUBLANES))
    blocks_total = pl.cdiv(rows, block_rows)
    n_blocks = pl.cdiv(blocks_total, NUM_SHARDS)
    ragged = (NUM_SHARDS * n_blocks * block_rows) != rows

    if ragged:
        def block_index(p, j):
            # Clamp so redundant trailing grid steps re-read a valid block;
            # their contribution is masked to zero inside the kernel.
            return (jnp.minimum(p * n_blocks + j, blocks_total - 1), 0)
    else:
        def block_index(p, j):
            return (p * n_blocks + j, 0)

    kernel = functools.partial(
        _focal_loss_kernel, gamma=gamma, binary_targets=binary_targets,
        approx_recip=approx_recip, rows_valid=rows, block_rows=block_rows,
        n_blocks=n_blocks, ragged=ragged)

    partials = pl.pallas_call(
        kernel,
        out_shape=jax.ShapeDtypeStruct((NUM_SHARDS * SUBLANES, LANES),
                                       jnp.float32),
        grid_spec=pltpu.PrefetchScalarGridSpec(
            num_scalar_prefetch=0,
            grid=(NUM_SHARDS, n_blocks),
            in_specs=[
                pl.BlockSpec((block_rows, LANES), block_index),
                pl.BlockSpec((block_rows, LANES), block_index),
            ],
            out_specs=pl.BlockSpec((SUBLANES, LANES), lambda p, j: (p, 0)),
        ),
        compiler_params=pltpu.CompilerParams(
            dimension_semantics=("parallel", "arbitrary"),
            vmem_limit_bytes=32 * 1024 * 1024,
        ),
    )(x2d, t2d)

    # Tiny (NUM_SHARDS*8 x 128) combine in XLA; alpha (and 1/N) applied once.
    scale = alpha / total if reduction == "mean" else alpha
    return jnp.sum(partials) * jnp.float32(scale)


def _focal_loss_ref(inputs, targets, alpha=ALPHA, gamma=GAMMA):
    x = inputs.astype(jnp.float32)
    t = targets.astype(jnp.float32)
    bce = jnp.maximum(x, 0.0) - x * t + jnp.log1p(jnp.exp(-jnp.abs(x)))
    pt = jnp.exp(-bce)
    return jnp.mean(alpha * (1.0 - pt) ** gamma * bce)


if __name__ == "__main__":
    key = jax.random.PRNGKey(0)
    k_x, k_t = jax.random.split(key)

    # NCHW inputs: batch=2, channels=4, spatial=16x16
    shape = (2, 4, 16, 16)
    logits = jax.random.normal(k_x, shape, dtype=jnp.float32)
    targets = jax.random.bernoulli(k_t, 0.3, shape).astype(jnp.float32)

    # Targets here are {0,1}, so the binary fast path (one fewer exp/element)
    # is exact.  approx_recip stays False so the f32 reference check is tight.
    loss = focal_loss(logits, targets, binary_targets=True)
    jax.block_until_ready(loss)

    ref = _focal_loss_ref(logits, targets)
    assert jnp.allclose(loss, ref, rtol=1e-5, atol=1e-6), (loss, ref)

    print("KERNEL_OK")
</pallas_src>

<mosaic_0001>
module attributes {stable_mosaic.version = 11 : i64} {
  func.func @_focal_loss_kernel(%arg0: i32, %arg1: i32, %arg2: memref<8x128xf32, #tpu.memory_space<vmem>>, %arg3: memref<8x128xf32, #tpu.memory_space<vmem>>, %arg4: memref<8x128xf32, #tpu.memory_space<vmem>>) attributes {dimension_semantics = [#tpu.dimension_semantics<parallel>, #tpu.dimension_semantics<arbitrary>], iteration_bounds = array<i64: 2, 1>, scalar_prefetch = 0 : i64, scratch_operands = 0 : i64, tpu.core_type = #tpu.core_type<tc>, window_params = [{transform_indices = @transform_0, window_bounds = array<i64: 8, 128>}, {transform_indices = @transform_1, window_bounds = array<i64: 8, 128>}, {transform_indices = @transform_2, window_bounds = array<i64: 8, 128>}]} {
    %c0_i32 = arith.constant 0 : i32
    %0 = arith.cmpi eq, %arg1, %c0_i32 : i32
    %1 = arith.extui %0 : i1 to i32
    %c0_i32_0 = arith.constant 0 : i32
    %2 = arith.cmpi ne, %1, %c0_i32_0 : i32
    scf.if %2 {
      %cst_16 = arith.constant 0.000000e+00 : f32
      %37 = vector.broadcast %cst_16 : f32 to vector<8x128xf32>
      %c0_17 = arith.constant 0 : index
      %c0_18 = arith.constant 0 : index
      %38 = vector.load %arg4[%c0_17, %c0_18] : memref<8x128xf32, #tpu.memory_space<vmem>>, vector<8x128xf32>
      tpu.vector_store %arg4[%c0_17, %c0_18], %37 {strides = array<i32>} : memref<8x128xf32, #tpu.memory_space<vmem>>, vector<8x128xf32>,
    } else {
    }
    %c0 = arith.constant 0 : index
    %c0_1 = arith.constant 0 : index
    %3 = vector.load %arg2[%c0, %c0_1] : memref<8x128xf32, #tpu.memory_space<vmem>>, vector<8x128xf32>
    %c0_2 = arith.constant 0 : index
    %c0_3 = arith.constant 0 : index
    %4 = vector.load %arg3[%c0_2, %c0_3] : memref<8x128xf32, #tpu.memory_space<vmem>>, vector<8x128xf32>
    %5 = math.absf %3 : vector<8x128xf32>
    %cst = arith.constant 0.000000e+00 : f32
    %6 = vector.broadcast %cst : f32 to vector<8x128xf32>
    %7 = arith.subf %6, %5 : vector<8x128xf32>
    %8 = math.exp %7 : vector<8x128xf32>
    %cst_4 = arith.constant 0.000000e+00 : f32
    %9 = vector.broadcast %cst_4 : f32 to vector<8x128xf32>
    %10 = arith.maximumf %3, %9 : vector<8x128xf32>
    %11 = arith.mulf %3, %4 : vector<8x128xf32>
    %12 = arith.subf %10, %11 : vector<8x128xf32>
    %cst_5 = arith.constant 1.000000e+00 : f32
    %13 = vector.broadcast %cst_5 : f32 to vector<8x128xf32>
    %14 = arith.addf %13, %8 : vector<8x128xf32>
    %15 = math.log %14 : vector<8x128xf32>
    %16 = arith.addf %12, %15 : vector<8x128xf32>
    %cst_6 = arith.constant 0.000000e+00 : f32
    %17 = vector.broadcast %cst_6 : f32 to vector<8x128xf32>
    %18 = arith.cmpf oge, %3, %17 : vector<8x128xf32>
    %cst_7 = arith.constant 5.000000e-01 : f32
    %19 = vector.broadcast %cst_7 : f32 to vector<8x128xf32>
    %20 = arith.cmpf oge, %4, %19 : vector<8x128xf32>
    %21 = arith.xori %18, %20 : vector<8x128xi1>
    %cst_8 = arith.constant 1.000000e+00 : f32
    %22 = vector.broadcast %cst_8 : f32 to vector<8x128xf32>
    %23 = arith.select %21, %8, %22 : vector<8x128xi1>, vector<8x128xf32>
    %cst_9 = arith.constant 1.000000e+00 : f32
    %24 = vector.broadcast %cst_9 : f32 to vector<8x128xf32>
    %25 = arith.addf %24, %8 : vector<8x128xf32>
    %26 = tpu.reciprocal %25 : vector<8x128xf32> -> vector<8x128xf32>
    %27 = arith.mulf %23, %26 : vector<8x128xf32>
    %cst_10 = arith.constant 1.000000e+00 : f32
    %28 = vector.broadcast %cst_10 : f32 to vector<8x128xf32>
    %29 = arith.subf %28, %27 : vector<8x128xf32>
    %30 = arith.mulf %29, %29 : vector<8x128xf32>
    %31 = arith.mulf %30, %16 : vector<8x128xf32>
    %c0_11 = arith.constant 0 : index
    %c0_12 = arith.constant 0 : index
    %32 = vector.load %arg4[%c0_11, %c0_12] : memref<8x128xf32, #tpu.memory_space<vmem>>, vector<8x128xf32>
    %33 = vector.shape_cast %31 : vector<8x128xf32> to vector<1x8x128xf32>
    %cst_13 = arith.constant dense<0.000000e+00> : vector<8x128xf32>
    %34 = vector.multi_reduction <add>, %33, %cst_13 [0] : vector<1x8x128xf32> to vector<8x128xf32>
    %35 = arith.addf %32, %34 : vector<8x128xf32>
    %c0_14 = arith.constant 0 : index
    %c0_15 = arith.constant 0 : index
    %36 = vector.load %arg4[%c0_14, %c0_15] : memref<8x128xf32, #tpu.memory_space<vmem>>, vector<8x128xf32>
    tpu.vector_store %arg4[%c0_14, %c0_15], %35 {strides = array<i32>} : memref<8x128xf32, #tpu.memory_space<vmem>>, vector<8x128xf32>,
    return
  }
  func.func @transform_0(%arg0: i32, %arg1: i32) -> (i32, i32) {
    %c1_i32 = arith.constant 1 : i32
    %0 = arith.muli %arg0, %c1_i32 : i32
    %1 = arith.addi %0, %arg1 : i32
    %c0_i32 = arith.constant 0 : i32
    %c0_i32_0 = arith.constant 0 : i32
    return %1, %c0_i32 : i32, i32
  }
  func.func @transform_1(%arg0: i32, %arg1: i32) -> (i32, i32) {
    %c1_i32 = arith.constant 1 : i32
    %0 = arith.muli %arg0, %c1_i32 : i32
    %1 = arith.addi %0, %arg1 : i32
    %c0_i32 = arith.constant 0 : i32
    %c0_i32_0 = arith.constant 0 : i32
    return %1, %c0_i32 : i32, i32
  }
  func.func @transform_2(%arg0: i32, %arg1: i32) -> (i32, i32) {
    %c0_i32 = arith.constant 0 : i32
    %c0_i32_0 = arith.constant 0 : i32
    return %arg0, %c0_i32 : i32, i32
  }
}

</mosaic_0001>

<bundles_post_ra>
// kernel: tpu_custom_call.1
= control target key start
LH: loop header
LB: loop body
LE: loop exit
PB: predicated region body
PF: predicated region fallthrough
CT: control target
= control target key end

     0   :  { %7 = vsyncpa [#allocation3], 0  ;;  %s845_s0 = inlined_call_operand.hbm [shape: f32[16,128], index: 0, kind: input, shape index: {}]   ;;  %s846_s1 = inlined_call_operand.hbm [shape: f32[16,128], index: 1, kind: input, shape index: {}]   ;;  %s847_s2 = inlined_call_operand.hbm [shape: f32[16,128], index: 2, kind: output, shape index: {}]  }
   0x1   :  { %9 = vsyncpa [#allocation3 + $0x1], 0 }
   0x2   :  { %10 = vsyncpa [#allocation6], 0 }
   0x3   :  { %12 = vsyncpa [#allocation6 + $0x1], 0 }
   0x4   :  { %13 = vsyncpa [#allocation4], 0 }
   0x5   :  { %15 = vsyncpa [#allocation4 + $0x1], 0  ;;  %s620_s9 = smov 0   ;;  %s622_s10 = smov 0  }
   0x6   :  { %s624_s11 = smov 0   ;;  %s626_s12 = smov 0  }
   0x7   :  { %s628_s13 = smov 0   ;;  %s630_s14 = smov 0  }
   0x8 LB: > { %s364_s15 = sadd.s32 4294967295, %s600_s14   ;;  %s365_s16 = sadd.s32 4294967294, %s600_s14   ;;  %s600_s14 = sphi %s630_s14, %s21_s14   ;;  %s596_s13 = sphi %s628_s13, %s867_s13   ;;  %s592_s12 = sphi %s626_s12, %s866_s12   ;;  %s588_s11 = sphi %s624_s11, %s865_s11   ;;  %s584_s10 = sphi %s622_s10, %s864_s10   ;;  %s580_s9 = sphi %s620_s9, %s863_s9  }
   0x9   : > { %s33_s17 = sadd.s32 1, %s596_s13  ;;  %s42_s18 = sadd.s32 1, %s588_s11 }
   0xa   : > { %p35_p0 = scmp.ge.s32.totalorder %s33_s17, 2  ;;  %p49_p1 = scmp.ne.s32.totalorder %s588_s11, %s584_s10 }
   0xb   : > { %p50_p2 = scmp.eq.s32.totalorder %s600_s14, 0  ;;  %p55_p3 = scmp.ne.s32.totalorder %s584_s10, %s580_s9 }
   0xc   : > { %s869_s17 = smov (%p35_p0, %s33_s17), 0  ;;  %p56_p5 = scmp.eq.s32.totalorder %s364_s15, 0 }
   0xd   : > { %p661_p4 = por %p50_p2, %p49_p1  ;;  %s39_s20 = ssub.s32 %s596_s13, %s869_s17 }
   0xe   : > { %p107_p6 = scmp.eq.s32.totalorder %s364_s15, 1  ;;  %p40_p7 = scmp.eq.s32.totalorder %s39_s20, 0 }
   0xf   : > { %p667_p8 = por %p56_p5, %p55_p3  ;;  %p113_p10 = scmp.eq.s32.totalorder %s365_s16, 1 }
  0x10   : > { %p671_p9 = por %p107_p6, %p49_p1  ;;  %p397_p13 = scmp.lt.s32.totalorder %s600_s14, 2 }
  0x11   : > { %s851_s21 = scalar_select %p667_p8, 1, 0 }
  0x12   : > { %s852_s22 = scalar_select %p671_p9, 1, 0 }
  0x13   : > { %s676_s23 = scalar_select %p40_p7, %s588_s11, %s42_s18  }
  0x14   : > { %p678_p11 = por %p113_p10, %p55_p3  ;;  %s685_s25 = sand.u32 1, %s588_s11  }
  0x15   : > { %s368_s26 = sshll.u32 %s685_s25, 3  ;;  %s369_s27 = sshll.u32 %s596_s13, 7 }
  0x16   : > { %s853_s24 = scalar_select %p678_p11, 1, 0 }
  0x17   : > { %s694_s30 = scalar_lea.hbm %s845_s0, %s369_s27  ;;  %s137_s3 = scalar_lea.vmem [#allocation2], %s368_s26 }
  0x18   : > { %s145_s4 = sshll.u32 %s137_s3, 4  ;;  %p702_p0 = pnand %p397_p13, %p661_p4  ;;  %s698_s4 = int_to_ptr.vmem [resolvable:$true] %s145_s4 }
  0x19   : > { %s134_s6 = scalar_lea.sflag [#allocation3], %s685_s25  ;;  %s454_s7 = scalar_lea.hbm %s694_s30, 128 }
  0x1a   : > { %p455_p3 = scmp.ne.s32.totalorder %s694_s30, %s454_s7  ;;  %p456_p5 = pneg %p702_p0 }
  0x1b   : > { %s459_s16 = scalar_lea.hbm %s845_s0, 256  ;;  %p460_p4 = scmp.lt.u32.totalorder %s694_s30, %s845_s0 }
  0x1c   : > { %p457_p6 = pnand %p456_p5, %p455_p3  ;;  %p461_p10 = scmp.lt.u32.totalorder %s459_s16, %s454_s7 }
  0x1d   : > { %p463_p12 = scmp.lt.u32.totalorder %s454_s7, %s694_s30 }
  0x1e   : > { %p458_p7 = pneg %p457_p6  ;;  %p462_p13 = por %p461_p10, %p460_p4 }
  0x20   : > { %p464_p1 = por %p463_p12, %p462_p13 }
  0x22   : > { %p465_p2 = pnand %p464_p1, %p458_p7 }
  0x24   : > { %468 = shalt.err (!%p465_p2)
}
  0x25   : > { %s469_s20 = scalar_lea.vmem %s698_s4, 128  ;;  %s602_s28 = smov [#allocation2]  }
  0x26   : > { %p470_p3 = scmp.ne.s32.totalorder %s698_s4, %s469_s20  ;;  %s474_s29 = sshll.u32 %s602_s28, 4  ;;  %s475_s29 = int_to_ptr.vmem [resolvable:$false] %s474_s29 }
  0x27   : > { %s476_s3 = scalar_lea.vmem %s475_s29, 256  ;;  %p477_p9 = scmp.lt.s32.totalorder %s698_s4, %s475_s29 }
  0x28   : > { %p472_p6 = pnand %p470_p3, %p456_p5  ;;  %p478_p4 = scmp.lt.s32.totalorder %s476_s3, %s469_s20 }
  0x2a   : > { %p473_p11 = pneg %p472_p6  ;;  %p479_p10 = por %p478_p4, %p477_p9 }
  0x2c   : > { %p480_p12 = pnand %p479_p10, %p473_p11 }
  0x2e   : > { %483 = shalt.err (!%p480_p12)
}
  0x2f   : > { %389 = dma.hbm_to_vmem [thread:$0]  (!%p702_p0), %s694_s30, 128, %s698_s4, %s134_s6  }
  0x30   : > { %p855_p1 = scmp.lt.s32.totalorder %s600_s14, 3  ;;  %p856_p2 = scmp.ge.s32.totalorder %s600_s14, 1 }
  0x31   : > { %s747_s16 = scalar_lea.hbm %s846_s1, %s369_s27  ;;  %s156_s18 = scalar_lea.vmem [#allocation5], %s368_s26 }
  0x32   : > { %p738_p7 = pnand %p856_p2, %p855_p1  ;;  %s164_s19 = sshll.u32 %s156_s18, 4  ;;  %s165_s19 = int_to_ptr.vmem [resolvable:$true] %s164_s19 }
  0x33   : > { %s153_s30 = scalar_lea.sflag [#allocation6], %s685_s25  ;;  %s484_s4 = scalar_lea.hbm %s747_s16, 128 }
  0x34   : > { %s857_s7 = scalar_select %p738_p7, 1, 0 }
  0x35   : > { %p485_p9 = scmp.ne.s32.totalorder %s747_s16, %s484_s4  ;;  %s489_s27 = scalar_lea.hbm %s846_s1, 256 }
  0x36   : > { %p490_p3 = scmp.lt.u32.totalorder %s747_s16, %s846_s1  ;;  %p491_p6 = scmp.lt.u32.totalorder %s489_s27, %s484_s4 }
  0x37   : > { %p487_p11 = pnand %p485_p9, %p456_p5  ;;  %p493_p10 = scmp.lt.u32.totalorder %s484_s4, %s747_s16 }
  0x38   : > { %p492_p4 = por %p491_p6, %p490_p3 }
  0x39   : > { %p488_p13 = pneg %p487_p11 }
  0x3a   : > { %p494_p12 = por %p493_p10, %p492_p4 }
  0x3c   : > { %p495_p1 = pnand %p494_p12, %p488_p13 }
  0x3e   : > { %498 = shalt.err (!%p495_p1)
}
  0x3f   : > { %s499_s25 = scalar_lea.vmem %s165_s19, 128  ;;  %s603_s26 = smov [#allocation5]  }
  0x40   : > { %p500_p2 = scmp.ne.s32.totalorder %s165_s19, %s499_s25  ;;  %s504_s3 = sshll.u32 %s603_s26, 4  ;;  %s505_s3 = int_to_ptr.vmem [resolvable:$false] %s504_s3 }
  0x41   : > { %s506_s8 = scalar_lea.vmem %s505_s3, 256  ;;  %p507_p8 = scmp.lt.s32.totalorder %s165_s19, %s505_s3 }
  0x42   : > { %p502_p9 = pnand %p500_p2, %p456_p5  ;;  %p508_p7 = scmp.lt.s32.totalorder %s506_s8, %s499_s25 }
  0x44   : > { %p503_p11 = pneg %p502_p9  ;;  %p509_p3 = por %p508_p7, %p507_p8 }
  0x46   : > { %p510_p6 = pnand %p509_p3, %p503_p11 }
  0x48   : > { %513 = shalt.err (!%p510_p6)
}
  0x49   : > { %392 = dma.hbm_to_vmem [thread:$0]  (!%p702_p0), %s747_s16, 128, %s165_s19, %s153_s30  }
  0x4a   : > { %p858_p13 = scmp.ne.s32.totalorder %s857_s7, 0 }
  0x4b   : > { %s774_s15 = sand.u32 (!%p858_p13), 1, %s584_s10   ;;  %p859_p8 = scmp.ne.s32.totalorder (!%p858_p13), %s851_s21, 0 }
  0x4c   : > { %173 = sbr.rel (%p858_p13) target bundleno = 140 (0x8c), region = 28  ;;  %s777_s18 = sshll.u32 (!%p858_p13), %s774_s15, 3 }
  0x4d   : > { %s176_s4 = scalar_lea.sflag (!%p858_p13), [#allocation3], %s774_s15  ;;  %s179_s6 = scalar_lea.vmem (!%p858_p13), [#allocation2], %s777_s18 }
  0x53   : > { %567 = dma.done.wait (%p859_p8), %s176_s4, 128  }
  0x54   : > { %569 = vsyncadd (%p859_p8), %s176_s4, 4294967168  ;;  %s185_s5 = scalar_lea.sflag [#allocation6], %s774_s15  ;;  %s188_s7 = scalar_lea.vmem [#allocation5], %s777_s18 }
  0x55   : > { %571 = dma.done.wait (%p859_p8), %s185_s5, 128  }
  0x56   : > { %573 = vsyncadd (%p859_p8), %s185_s5, 4294967168  ;;  %v221_v0 = vld [vmem:[%s179_s6] sm:$0xff]  ;;  %v222_v6 = vld [vmem:[%s188_s7] sm:$0xff]  ;;  %s377_s21 = sshll.u32 %s592_s12, 7  ;;  %s213_s16 = scalar_lea.vmem [#allocation7], %s777_s18 }
  0x57   : > { %v223_v1 = vand.u32 2147483647, %v221_v0  ;;  %vm234_vm0 = vcmp.ge.f32.partialorder %v221_v0, 0.0  ;;  %vm235_vm1 = vcmp.ge.f32.partialorder %v222_v6, 0.5  ;;  %v227_v7 = vmax.f32 %v221_v0, 0.0  ;;  %s261_s19 = sshll.u32 %s213_s16, 4  ;;  %s796_s27 = scalar_lea.hbm %s847_s2, %s377_s21  ;;  %s798_s19 = int_to_ptr.vmem [resolvable:$true] %s261_s19 }
  0x58   : > { %v228_v8 = vmul.f32 %v222_v6, %v221_v0  ;;  %vm236_vm2 = vmxor %vm234_vm0, %vm235_vm1  ;;  %s248_s28 = scalar_lea.sflag [#allocation4], %s774_s15  ;;  %s514_s29 = scalar_lea.vmem %s798_s19, 128 }
  0x59   : > { %v224_v2 = vsub.f32 0.0, %v223_v1  ;;  %p515_p0 = scmp.ne.s32.totalorder %s798_s19, %s514_s29  ;;  %p860_p5 = scmp.ne.s32.totalorder %s852_s22, 0 }
  0x5a   : > { %v229_v11 = vsub.f32 %v227_v7, %v228_v8  ;;  %s604_s12 = smov [#allocation7]  }
  0x5b   : > { %v225_v3 = vmul.f32 1.442695, %v224_v2  ;;  %p516_p7 = pnand %p515_p0, %p860_p5  ;;  %s518_s25 = sshll.u32 %s604_s12, 4  ;;  %s519_s25 = int_to_ptr.vmem [resolvable:$false] %s518_s25 }
  0x5c   : > { %s520_s26 = scalar_lea.vmem %s519_s25, 256  ;;  %p521_p10 = scmp.lt.s32.totalorder %s798_s19, %s519_s25 }
  0x5d   : > { %448 = vpow2.f32 %v225_v3  ;;  %p517_p4 = pneg %p516_p7  ;;  %p522_p12 = scmp.lt.s32.totalorder %s520_s26, %s514_s29 }
  0x5f   : > { %p523_p1 = por %p522_p12, %p521_p10 }
  0x61   : > { %p524_p2 = pnand %p523_p1, %p517_p4 }
  0x67   : > { %v449_v4 = vpop.eup %448 }
  0x68   : > { %v230_v5 = vadd.f32 1.0, %v449_v4  ;;  %v237_v9 = vsel %vm236_vm2, %v449_v4, 1.0 }
  0x6a   : > { %450 = vlog2.f32 %v230_v5 }
  0x6b   : > { %452 = vrcp.f32 %v230_v5 }
  0x74   : > { %v451_v10 = vpop.eup %450 }
  0x75   : > { %v453_v12 = vpop.eup %452  ;;  %v232_v13 = vmul.f32 0.6931472, %v451_v10 }
  0x76   : > { %v239_v14 = vmul.f32 %v453_v12, %v237_v9 }
  0x77   : > { %v233_v15 = vadd.f32 %v232_v13, %v229_v11 }
  0x78   : > { %v240_v16 = vsub.f32 1.0, %v239_v14 }
  0x7a   : > { %v241_v17 = vmul.f32 %v240_v16, %v240_v16 }
  0x7c   : > { %v242_v18 = vmul.f32 %v241_v17, %v233_v15 }
  0x7e   : > { %246 = vst [vmem:[%s213_s16] sm:$0xff] %v242_v18 }
  0x7f   : > { %527 = shalt.err (!%p524_p2)
}
  0x80   : > { %s528_s3 = scalar_lea.hbm %s796_s27, 128  ;;  %s532_s18 = scalar_lea.hbm %s847_s2, 256 }
  0x81   : > { %p529_p9 = scmp.ne.s32.totalorder %s796_s27, %s528_s3  ;;  %p533_p6 = scmp.lt.u32.totalorder %s796_s27, %s847_s2 }
  0x82   : > { %p534_p13 = scmp.lt.u32.totalorder %s532_s18, %s528_s3  ;;  %p536_p0 = scmp.lt.u32.totalorder %s528_s3, %s796_s27 }
  0x83   : > { %p530_p11 = pnand %p529_p9, %p860_p5 }
  0x84   : > { %p535_p8 = por %p534_p13, %p533_p6 }
  0x85   : > { %p531_p3 = pneg %p530_p11 }
  0x86   : > { %p537_p7 = por %p536_p0, %p535_p8 }
  0x88   : > { %p538_p4 = pnand %p537_p7, %p531_p3 }
  0x8a   : > { %541 = shalt.err (!%p538_p4)
}
  0x8b   : > { %384 = dma.vmem_to_hbm [thread:$0]  (%p860_p5), %s798_s19, 128, %s796_s27, %s248_s28  }
  0x8c PF: > { %s273_s5 = sand.u32 1, %s580_s9   ;;  %p861_p10 = scmp.ne.s32.totalorder %s853_s24, 0 }
  0x8d   : > { %p862_p12 = scmp.ge.s32.totalorder %s600_s14, 2  ;;  %s274_s7 = scalar_lea.sflag [#allocation4], %s273_s5 }
  0x8f   : > { %p394_p1 = pnand %p862_p12, %p861_p10 }
  0x91   : > { %575 = dma.done.wait (!%p394_p1), %s274_s7, 128  }
  0x92   : > { %577 = vsyncadd (!%p394_p1), %s274_s7, 4294967168  ;;  %s21_s14 = sadd.s32 1, %s600_s14   ;;  %s863_s9 = smov %s584_s10 }
  0x93   : > { %p18_p2 = scmp.ge.s32.totalorder %s21_s14, 4   ;;  %s864_s10 = smov %s588_s11 }
  0x94   : > { %s865_s11 = smov %s676_s23  ;;  %s866_s12 = smov %s596_s13 }
  0x95   : > { %s867_s13 = smov %s869_s17  ;;  %20 = sbr.rel (!%p18_p2) target bundleno = 8 (0x8), region = 90 }
  0x9c   :  { %279 = vsyncpa [#allocation3], 1 }
  0x9d   :  { %281 = vsyncpa [#allocation3 + $0x1], 1 }
  0x9e   :  { %282 = vsyncpa [#allocation6], 1 }
  0x9f   :  { %284 = vsyncpa [#allocation6 + $0x1], 1 }
  0xa0   :  { %285 = vsyncpa [#allocation4], 1 }
  0xa1   :  { %287 = vsyncpa [#allocation4 + $0x1], 1 }

</bundles_post_ra>
